<compile_context>
chip_gen: v7x
topology: tpu7x:2x2x1
jax: 0.10.0
libtpu: 0.0.40
codegen_flags: <defaults>
</compile_context>

<pallas_src>
import numpy as np

import jax
import jax.numpy as jnp
from jax.experimental import pallas as pl
from jax.experimental.pallas import tpu as pltpu


# ----------------------------------------------------------------------------
# Fused dense kernel: sigmoid(conf)^2 partial sums + proposal count
# ----------------------------------------------------------------------------
def _conf_kernel(x_ref, sq_ref, prop_ref):
    """x_ref: (TB, L) raw conf-channel logits. Accumulates lane-wide partial sums
    of sigmoid(x)^2 and of (sigmoid(x) > 0.25) across the (b,a)-row grid axis."""
    t = pl.program_id(1)

    @pl.when(t == 0)
    def _init():
        sq_ref[...] = jnp.zeros_like(sq_ref)
        prop_ref[...] = jnp.zeros_like(prop_ref)

    conf = jax.nn.sigmoid(x_ref[...])                                  # EUP
    sq_ref[...] += jnp.sum(conf * conf, axis=0, keepdims=True)
    prop_ref[...] += jnp.sum((conf > 0.25).astype(jnp.float32),
                             axis=0, keepdims=True)


def _choose_lane_block(HW):
    """Largest lane block L (multiple of 128) dividing HW with >=2 blocks so the
    leading 'parallel' grid axis can feed both TensorCores on v7x; else L = HW
    (block dim == full array dim is always legal)."""
    if HW % 128 == 0 and HW // 128 >= 2:
        n128 = HW // 128
        for nl in range(2, n128 + 1):
            if n128 % nl == 0:
                return HW // nl, nl
    return HW, 1


def _choose_row_block(BA, L, budget_bytes=2 * 1024 * 1024):
    """Largest multiple of 8 dividing BA within a ~2 MiB/block budget (the
    double-buffered input then stays far below every generation's VMEM);
    fall back to the full BA extent, which is always a legal block shape."""
    if BA <= 8:
        return BA
    max_rows = max(8, budget_bytes // (L * 4))
    best = None
    t = 8
    while t <= min(BA, max_rows):
        if BA % t == 0:
            best = t
        t += 8
    return best if best is not None else BA


def _conf_stats(conf2d):
    """conf2d: (BA, HW) f32 raw conf-channel logits.
    Returns (sum over all cells of sigmoid^2, count of cells with sigmoid > 0.25)."""
    BA, HW = conf2d.shape
    L, n_lane = _choose_lane_block(HW)
    TB = _choose_row_block(BA, L)
    n_ba = BA // TB
    out_sds = jax.ShapeDtypeStruct((1, HW), jnp.float32)
    sq, prop = pl.pallas_call(
        _conf_kernel,
        out_shape=(out_sds, out_sds),
        grid=(n_lane, n_ba),
        in_specs=[pl.BlockSpec((TB, L), lambda j, t: (t, j))],
        out_specs=(pl.BlockSpec((1, L), lambda j, t: (0, j)),
                   pl.BlockSpec((1, L), lambda j, t: (0, j))),
        compiler_params=pltpu.CompilerParams(
            dimension_semantics=("parallel", "arbitrary")),
    )(conf2d)
    return jnp.sum(sq), jnp.sum(prop)


# ----------------------------------------------------------------------------
# Host-side sparse target construction (data-dependent loop; no Pallas equivalent)
# ----------------------------------------------------------------------------
def corner_confidence9(gt_corners, pr_corners, th=80.0, sharpness=2.0,
                       im_w=640.0, im_h=480.0):
    # TODO(synk): corner_confidence9 was not included in the provided source;
    # this follows the canonical singleshotpose definition.
    dist = (np.asarray(gt_corners, np.float64)
            - np.asarray(pr_corners, np.float64)).reshape(9, 2)
    dist[:, 0] *= im_w
    dist[:, 1] *= im_h
    dist = np.sqrt(np.sum(dist ** 2, axis=1))
    mask = (dist < th).astype(np.float64)
    conf = np.exp(sharpness * (1.0 - dist / th)) - 1.0
    conf0 = np.exp(sharpness) - 1.0 + 1e-5
    conf = mask * (conf / conf0)
    return float(conf.mean())


def parse_gt_cells(target_np, nH, nW):
    """Host parse of the (nB, 50*21) target tensor -> list of (b, t, gi0, gj0)."""
    recs = []
    for b in range(target_np.shape[0]):
        for t in range(50):
            if target_np[b, t * 21 + 1] == 0:
                break
            gi0 = int(target_np[b, t * 21 + 1] * nW)
            gj0 = int(target_np[b, t * 21 + 2] * nH)
            recs.append((b, t, gi0, gj0))
    return recs


def build_targets_sparse(gath_np, recs, target_np, nH, nW,
                         noobject_scale, object_scale):
    """Sparse equivalent of the reference build_targets plus the GT-cell parts of
    the loss.  gath_np[k] holds the 19 raw logits (channels 0..18) at GT cell
    recs[k] (i.e. the row the reference indexes with b*nAnchors + gj0*nW + gi0).
    Returns (nGT, nCorrect, loss_xy_sum, conf_correction) where
      loss_xy_sum     = sum over unique GT cells of sum_18((act_xy - tar)^2)
      conf_correction = sum over unique GT cells of
                        object_scale*(conf - tconf)^2 - noobject_scale*conf^2
    so that loss_conf = 0.5*(noobject_scale*sum_all(conf^2) + conf_correction)."""
    nGT, nCorrect = 0, 0
    cells = {}   # (b, gj0, gi0) -> (act_xy, tar, conf_act, tconf); last record wins
    for k, (b, t, gi0, gj0) in enumerate(recs):
        nGT += 1
        best_n = 0  # TODO(synk): reference hard-codes best_n = 0 (no anchor selection)
        raw = gath_np[k].astype(np.float64)
        gt_box = target_np[b, t * 21 + 1:t * 21 + 19].astype(np.float64)

        # predict_corners row exactly as the reference builds it:
        # sigmoid on ch 0,1 then (x + gi)/nW, (y + gj)/nH on all 9 corners.
        pc = raw[:18].copy()
        pc[0] = 1.0 / (1.0 + np.exp(-pc[0]))
        pc[1] = 1.0 / (1.0 + np.exp(-pc[1]))
        pc[0::2] = (pc[0::2] + gi0) / nW
        pc[1::2] = (pc[1::2] + gj0) / nH
        tconf = corner_confidence9(gt_box, pc)
        if tconf > 0.5:
            nCorrect += 1

        # xys_pred as used by loss_xy: sigmoid ONLY on channels 0,1 (no grid offset)
        act_xy = raw[:18].copy()
        act_xy[0] = 1.0 / (1.0 + np.exp(-act_xy[0]))
        act_xy[1] = 1.0 / (1.0 + np.exp(-act_xy[1]))

        tar = np.empty(18, np.float64)
        tar[0::2] = gt_box[0::2] * nW - gi0
        tar[1::2] = gt_box[1::2] * nH - gj0

        conf_act = 1.0 / (1.0 + np.exp(-raw[18]))
        cells[(b, best_n, gj0, gi0)] = (act_xy, tar, conf_act, tconf)

    loss_xy_sum, conf_corr = 0.0, 0.0
    for act_xy, tar, conf_act, tconf in cells.values():
        loss_xy_sum += float(np.sum((act_xy - tar) ** 2))
        conf_corr += (object_scale * (conf_act - tconf) ** 2
                      - noobject_scale * conf_act ** 2)
    return nGT, nCorrect, loss_xy_sum, conf_corr


# ----------------------------------------------------------------------------
# Module wrapper
# ----------------------------------------------------------------------------
class RegionLoss:
    def __init__(self, num_classes=0, anchors=(), num_anchors=1):
        self.num_classes = num_classes
        self.anchors = list(anchors)
        self.num_anchors = num_anchors
        self.anchor_step = len(self.anchors) / max(num_anchors, 1)
        self.coord_scale = 1
        self.noobject_scale = 1
        self.object_scale = 5
        self.class_scale = 1
        self.thresh = 0.6   # unused in the reference forward; kept for parity
        self.seen = 0

    def forward(self, output, target):
        output = jnp.asarray(output, jnp.float32)
        nB, ch, nH, nW = output.shape
        nA = self.num_anchors
        nC = self.num_classes
        C19 = 19 + nC
        assert ch == nA * C19
        HW = nH * nW
        BA = nB * nA
        out5 = output.reshape(BA, C19, HW)            # free reshape, no copy

        # ---- dense part: stream only the conf channel through the kernel ----
        conf2d = out5[:, 18, :]                       # (BA, HW): reads ~1/(19+nC) of output
        sum_conf_sq, n_prop = _conf_stats(conf2d)     # dispatched now; overlaps host work

        # ---- sparse part: gather the 19 logits at the <=50*nB GT cells ------
        target_np = np.asarray(jax.device_get(target), np.float32).reshape(nB, -1)
        recs = parse_gt_cells(target_np, nH, nW)
        nGT, nCorrect, loss_xy_h, conf_corr = 0, 0, 0.0, 0.0
        if recs:
            # fixed-size index arrays -> static gather shape (no recompiles vs nGT)
            max_gt = nB * 50
            rows = np.zeros((max_gt,), np.int32)
            cols = np.zeros((max_gt,), np.int32)
            for k, (b, _t, gi, gj) in enumerate(recs):
                rows[k] = b * nA                      # best_n == 0
                cols[k] = gj * nW + gi
            chans = jnp.arange(19, dtype=jnp.int32)
            gath = out5[jnp.asarray(rows)[:, None], chans[None, :],
                        jnp.asarray(cols)[:, None]]   # (nB*50, 19), tiny
            gath_np = np.asarray(jax.device_get(gath), np.float64)[:len(recs)]
            nGT, nCorrect, loss_xy_h, conf_corr = build_targets_sparse(
                gath_np, recs, target_np, nH, nW,
                self.noobject_scale, self.object_scale)

        # TODO(synk): class loss is omitted because the reference forward never adds one
        # (tcls/cls_mask are computed but unused there).
        loss_xy = jnp.asarray(self.coord_scale * 0.5 * loss_xy_h, dtype=jnp.float32)
        loss_conf = 0.5 * (self.noobject_scale * sum_conf_sq
                           + jnp.float32(conf_corr))
        loss = loss_xy + loss_conf

        lxy_v, lconf_v, loss_v, nprop_v = jax.device_get(
            jnp.stack([loss_xy, loss_conf, loss, n_prop]))
        nProposals = int(round(float(nprop_v)))
        print('nGT %d, recall %d, proposals %d, loss: xy %f, conf %f,cls  total %f'
              % (nGT, nCorrect, nProposals,
                 float(lxy_v), float(lconf_v), float(loss_v)))
        return loss


# ----------------------------------------------------------------------------
if __name__ == "__main__":
    key = jax.random.PRNGKey(0)
    nB, nA, nC, nH, nW = 2, 1, 0, 16, 16
    k1, k2 = jax.random.split(key)

    # "output" is the NCHW feature map the loss consumes: (nB, nA*(19+nC), nH, nW)
    x = jax.random.normal(k1, (nB, nA * (19 + nC), nH, nW), jnp.float32)

    # Deterministic target tensor: (nB, 50*21); per GT record:
    # [class, x0, y0, x1, y1, ..., x8, y8, pad, pad]; x0==0 terminates the list.
    corners = np.asarray(jax.random.uniform(
        k2, (nB, 2, 18), minval=0.05, maxval=0.95), np.float32)
    target_np = np.zeros((nB, 50 * 21), np.float32)
    n_gt = [1, 2]
    for b in range(nB):
        for t in range(n_gt[b]):
            target_np[b, t * 21] = 0.0                       # class id
            target_np[b, t * 21 + 1:t * 21 + 19] = corners[b, t]
    target = jnp.asarray(target_np)

    loss_mod = RegionLoss(num_classes=nC, anchors=[], num_anchors=nA)
    loss = loss_mod.forward(x, target)
    jax.block_until_ready(loss)
    print("KERNEL_OK")
</pallas_src>

<mosaic_0001>
module attributes {stable_mosaic.version = 11 : i64} {
  func.func @_conf_kernel(%arg0: i32, %arg1: i32, %arg2: memref<2x128xf32, #tpu.memory_space<vmem>>, %arg3: memref<1x128xf32, #tpu.memory_space<vmem>>, %arg4: memref<1x128xf32, #tpu.memory_space<vmem>>) attributes {dimension_semantics = [#tpu.dimension_semantics<parallel>, #tpu.dimension_semantics<arbitrary>], iteration_bounds = array<i64: 2, 1>, scalar_prefetch = 0 : i64, scratch_operands = 0 : i64, tpu.core_type = #tpu.core_type<tc>, window_params = [{transform_indices = @transform_0, window_bounds = array<i64: 2, 128>}, {transform_indices = @transform_1, window_bounds = array<i64: 1, 128>}, {transform_indices = @transform_2, window_bounds = array<i64: 1, 128>}]} {
    %c0_i32 = arith.constant 0 : i32
    %0 = arith.cmpi eq, %arg1, %c0_i32 : i32
    %1 = arith.extui %0 : i1 to i32
    %c0_i32_0 = arith.constant 0 : i32
    %2 = arith.cmpi ne, %1, %c0_i32_0 : i32
    scf.if %2 {
      %cst_13 = arith.constant 0.000000e+00 : f32
      %24 = vector.broadcast %cst_13 : f32 to vector<1x128xf32>
      %c0_14 = arith.constant 0 : index
      %c0_15 = arith.constant 0 : index
      %25 = vector.load %arg3[%c0_14, %c0_15] : memref<1x128xf32, #tpu.memory_space<vmem>>, vector<1x128xf32>
      tpu.vector_store %arg3[%c0_14, %c0_15], %24 {strides = array<i32>} : memref<1x128xf32, #tpu.memory_space<vmem>>, vector<1x128xf32>,
      %cst_16 = arith.constant 0.000000e+00 : f32
      %26 = vector.broadcast %cst_16 : f32 to vector<1x128xf32>
      %c0_17 = arith.constant 0 : index
      %c0_18 = arith.constant 0 : index
      %27 = vector.load %arg4[%c0_17, %c0_18] : memref<1x128xf32, #tpu.memory_space<vmem>>, vector<1x128xf32>
      tpu.vector_store %arg4[%c0_17, %c0_18], %26 {strides = array<i32>} : memref<1x128xf32, #tpu.memory_space<vmem>>, vector<1x128xf32>,
    } else {
    }
    %c0 = arith.constant 0 : index
    %c0_1 = arith.constant 0 : index
    %3 = vector.load %arg2[%c0, %c0_1] : memref<2x128xf32, #tpu.memory_space<vmem>>, vector<2x128xf32>
    %4 = arith.negf %3 : vector<2x128xf32>
    %5 = math.exp %4 : vector<2x128xf32>
    %cst = arith.constant 1.000000e+00 : f32
    %6 = vector.broadcast %cst : f32 to vector<2x128xf32>
    %7 = arith.addf %6, %5 : vector<2x128xf32>
    %8 = arith.divf %6, %7 : vector<2x128xf32>
    %c0_2 = arith.constant 0 : index
    %c0_3 = arith.constant 0 : index
    %9 = vector.load %arg3[%c0_2, %c0_3] : memref<1x128xf32, #tpu.memory_space<vmem>>, vector<1x128xf32>
    %10 = arith.mulf %8, %8 : vector<2x128xf32>
    %cst_4 = arith.constant dense<0.000000e+00> : vector<128xf32>
    %11 = vector.multi_reduction <add>, %10, %cst_4 [0] : vector<2x128xf32> to vector<128xf32>
    %12 = vector.shape_cast %11 : vector<128xf32> to vector<1x128xf32>
    %13 = arith.addf %9, %12 : vector<1x128xf32>
    %c0_5 = arith.constant 0 : index
    %c0_6 = arith.constant 0 : index
    %14 = vector.load %arg3[%c0_5, %c0_6] : memref<1x128xf32, #tpu.memory_space<vmem>>, vector<1x128xf32>
    tpu.vector_store %arg3[%c0_5, %c0_6], %13 {strides = array<i32>} : memref<1x128xf32, #tpu.memory_space<vmem>>, vector<1x128xf32>,
    %c0_7 = arith.constant 0 : index
    %c0_8 = arith.constant 0 : index
    %15 = vector.load %arg4[%c0_7, %c0_8] : memref<1x128xf32, #tpu.memory_space<vmem>>, vector<1x128xf32>
    %cst_9 = arith.constant 2.500000e-01 : f32
    %16 = vector.broadcast %cst_9 : f32 to vector<2x128xf32>
    %17 = arith.cmpf ogt, %8, %16 : vector<2x128xf32>
    %18 = arith.extui %17 : vector<2x128xi1> to vector<2x128xi32>
    %19 = arith.sitofp %18 : vector<2x128xi32> to vector<2x128xf32>
    %cst_10 = arith.constant dense<0.000000e+00> : vector<128xf32>
    %20 = vector.multi_reduction <add>, %19, %cst_10 [0] : vector<2x128xf32> to vector<128xf32>
    %21 = vector.shape_cast %20 : vector<128xf32> to vector<1x128xf32>
    %22 = arith.addf %15, %21 : vector<1x128xf32>
    %c0_11 = arith.constant 0 : index
    %c0_12 = arith.constant 0 : index
    %23 = vector.load %arg4[%c0_11, %c0_12] : memref<1x128xf32, #tpu.memory_space<vmem>>, vector<1x128xf32>
    tpu.vector_store %arg4[%c0_11, %c0_12], %22 {strides = array<i32>} : memref<1x128xf32, #tpu.memory_space<vmem>>, vector<1x128xf32>,
    return
  }
  func.func @transform_0(%arg0: i32, %arg1: i32) -> (i32, i32) {
    %c0_i32 = arith.constant 0 : i32
    return %arg1, %arg0 : i32, i32
  }
  func.func @transform_1(%arg0: i32, %arg1: i32) -> (i32, i32) {
    %c0_i32 = arith.constant 0 : i32
    %c0_i32_0 = arith.constant 0 : i32
    return %c0_i32, %arg0 : i32, i32
  }
  func.func @transform_2(%arg0: i32, %arg1: i32) -> (i32, i32) {
    %c0_i32 = arith.constant 0 : i32
    %c0_i32_0 = arith.constant 0 : i32
    return %c0_i32, %arg0 : i32, i32
  }
}

</mosaic_0001>

<bundles_post_ra>
// kernel: tpu_custom_call.1
= control target key start
LH: loop header
LB: loop body
LE: loop exit
PB: predicated region body
PF: predicated region fallthrough
CT: control target
= control target key end

     0   :  { %8 = vsyncpa [#allocation3], 0  ;;  %s822_s0 = inlined_call_operand.hbm [shape: f32[2,256], index: 0, kind: input, shape index: {}]   ;;  %s823_s1 = inlined_call_operand.hbm [shape: f32[1,256], index: 1, kind: output, shape index: {0}]   ;;  %s824_s2 = inlined_call_operand.hbm [shape: f32[1,256], index: 2, kind: output, shape index: {1}]  }
   0x1   :  { %10 = vsyncpa [#allocation3 + $0x1], 0 }
   0x2   :  { %11 = vsyncpa [#allocation4], 0 }
   0x3   :  { %13 = vsyncpa [#allocation4 + $0x1], 0 }
   0x4   :  { %14 = vsyncpa [#allocation7], 0 }
   0x5   :  { %16 = vsyncpa [#allocation7 + $0x1], 0  ;;  %s607_s9 = smov 0   ;;  %s609_s10 = smov 0  }
   0x6   :  { %s611_s11 = smov 0   ;;  %s613_s12 = smov 0  }
   0x7   :  { %s615_s13 = smov 0   ;;  %s617_s14 = smov 0  }
   0x8 LB: > { %s356_s15 = sadd.s32 4294967295, %s586_s14   ;;  %s357_s16 = sadd.s32 4294967294, %s586_s14   ;;  %s586_s14 = sphi %s617_s14, %s22_s14   ;;  %s582_s13 = sphi %s615_s13, %s840_s13   ;;  %s578_s12 = sphi %s613_s12, %s839_s12   ;;  %s574_s11 = sphi %s611_s11, %s838_s11   ;;  %s570_s10 = sphi %s609_s10, %s837_s10   ;;  %s566_s9 = sphi %s607_s9, %s836_s9  }
   0x9   : > { %s34_s17 = sadd.s32 1, %s582_s13  ;;  %s43_s18 = sadd.s32 1, %s574_s11 }
   0xa   : > { %p36_p0 = scmp.ge.s32.totalorder %s34_s17, 2  ;;  %p50_p1 = scmp.ne.s32.totalorder %s574_s11, %s570_s10 }
   0xb   : > { %p51_p2 = scmp.eq.s32.totalorder %s586_s14, 0  ;;  %p56_p3 = scmp.ne.s32.totalorder %s570_s10, %s566_s9 }
   0xc   : > { %s842_s17 = smov (%p36_p0, %s34_s17), 0  ;;  %p57_p5 = scmp.eq.s32.totalorder %s356_s15, 0 }
   0xd   : > { %p648_p4 = por %p51_p2, %p50_p1  ;;  %s39_s20 = ssub.s32 %s582_s13, %s842_s17 }
   0xe   : > { %p80_p6 = scmp.eq.s32.totalorder %s356_s15, 1  ;;  %p41_p7 = scmp.eq.s32.totalorder %s39_s20, 0 }
   0xf   : > { %p654_p8 = por %p57_p5, %p56_p3  ;;  %p86_p10 = scmp.eq.s32.totalorder %s357_s16, 1 }
  0x10   : > { %p658_p9 = por %p80_p6, %p50_p1  ;;  %p387_p13 = scmp.lt.s32.totalorder %s586_s14, 2 }
  0x11   : > { %s663_s23 = scalar_select %p41_p7, %s574_s11, %s43_s18  }
  0x12   : > { %s828_s22 = scalar_select %p658_p9, 1, 0 }
  0x13   : > { %p665_p11 = por %p86_p10, %p56_p3  ;;  %s132_s25 = sand.u32 1, %s574_s11  }
  0x14   : > { %s360_s26 = sshll.u32 %s132_s25, 1  ;;  %s361_s27 = sshll.u32 %s582_s13, 5 }
  0x15   : > { %s829_s24 = scalar_select %p665_p11, 1, 0 }
  0x16   : > { %s676_s30 = scalar_lea.hbm %s822_s0, %s361_s27  ;;  %s136_s3 = scalar_lea.vmem [#allocation2], %s360_s26 }
  0x17   : > { %s145_s4 = sshll.u32 %s136_s3, 4  ;;  %p682_p0 = pnand %p387_p13, %p648_p4  ;;  %s678_s4 = int_to_ptr.vmem [resolvable:$true] %s145_s4 }
  0x18   : > { %s133_s6 = scalar_lea.sflag [#allocation3], %s132_s25  ;;  %s442_s7 = scalar_lea.hbm %s676_s30, 32 }
  0x19   : > { %p443_p3 = scmp.ne.s32.totalorder %s676_s30, %s442_s7  ;;  %p444_p5 = pneg %p682_p0 }
  0x1a   : > { %s447_s16 = scalar_lea.hbm %s822_s0, 64  ;;  %p448_p4 = scmp.lt.u32.totalorder %s676_s30, %s822_s0 }
  0x1b   : > { %p445_p6 = pnand %p444_p5, %p443_p3  ;;  %p449_p10 = scmp.lt.u32.totalorder %s447_s16, %s442_s7 }
  0x1c   : > { %p451_p12 = scmp.lt.u32.totalorder %s442_s7, %s676_s30 }
  0x1d   : > { %p446_p7 = pneg %p445_p6  ;;  %p450_p13 = por %p449_p10, %p448_p4 }
  0x1f   : > { %p452_p1 = por %p451_p12, %p450_p13 }
  0x21   : > { %p453_p2 = pnand %p452_p1, %p446_p7 }
  0x23   : > { %456 = shalt.err (!%p453_p2)
}
  0x24   : > { %s457_s20 = scalar_lea.vmem %s678_s4, 32  ;;  %s588_s25 = smov [#allocation2]  }
  0x25   : > { %p458_p3 = scmp.ne.s32.totalorder %s678_s4, %s457_s20  ;;  %s462_s26 = sshll.u32 %s588_s25, 4  ;;  %s463_s26 = int_to_ptr.vmem [resolvable:$false] %s462_s26 }
  0x26   : > { %s464_s27 = scalar_lea.vmem %s463_s26, 64  ;;  %p465_p9 = scmp.lt.s32.totalorder %s678_s4, %s463_s26 }
  0x27   : > { %p460_p6 = pnand %p458_p3, %p444_p5  ;;  %p466_p4 = scmp.lt.s32.totalorder %s464_s27, %s457_s20 }
  0x29   : > { %p461_p11 = pneg %p460_p6  ;;  %p467_p10 = por %p466_p4, %p465_p9 }
  0x2b   : > { %p468_p12 = pnand %p467_p10, %p461_p11 }
  0x2d   : > { %471 = shalt.err (!%p468_p12)
}
  0x2e   : > { %379 = dma.hbm_to_vmem [thread:$0]  (!%p682_p0), %s676_s30, 32, %s678_s4, %s133_s6  }
  0x2f   : > { %p831_p1 = scmp.lt.s32.totalorder %s586_s14, 3  ;;  %p832_p2 = scmp.ge.s32.totalorder %s586_s14, 1 }
  0x31   : > { %p151_p5 = pnand %p832_p2, %p831_p1 }
  0x32   : > { %s718_s28 = sand.u32 (!%p151_p5), 1, %s570_s10  }
  0x33   : > { %154 = sbr.rel (%p151_p5) target bundleno = 140 (0x8c), region = 24  ;;  %s363_s29 = sshll.u32 (!%p151_p5), %s718_s28, 1 }
  0x34   : > { %s157_s3 = scalar_lea.sflag (!%p151_p5), [#allocation3], %s718_s28  ;;  %s160_s7 = scalar_lea.vmem (!%p151_p5), [#allocation2], %s363_s29 }
  0x3a   : > { %553 = dma.done.wait (%p654_p8), %s157_s3, 32  }
  0x3b   : > { %555 = vsyncadd (%p654_p8), %s157_s3, 4294967264  ;;  %s727_s30 = scalar_lea.vmem [#allocation5], %s718_s28  ;;  %v589_v0 = vmov 0.0   ;;  %s731_s4 = scalar_lea.vmem [#allocation6], %s718_s28  ;;  %v190_v1 = vld [vmem:[%s160_s7] sm:$0x3] }
  0x3c   : > { %188 = vst [vmem:[%s727_s30] sm:$0x1] %v589_v0  ;;  %189 = vst [vmem:[%s731_s4] sm:$0x1] %v589_v0  ;;  %v364_v2 = vmul.f32 -1.442695, %v190_v1  ;;  %vm199_vm0 = vcmask 1041408   ;;  %s366_s21 = sshll.u32 %s578_s12, 4 }
  0x3d   : > { %s239_s5 = sshll.u32 %s727_s30, 4  ;;  %s252_s6 = sshll.u32 %s731_s4, 4  ;;  %s744_s5 = int_to_ptr.vmem [resolvable:$true] %s239_s5  ;;  %s751_s6 = int_to_ptr.vmem [resolvable:$true] %s252_s6 }
  0x3e   : > { %438 = vpow2.f32 %v364_v2  ;;  %s742_s16 = scalar_lea.hbm %s823_s1, %s366_s21  ;;  %s749_s12 = scalar_lea.hbm %s824_s2, %s366_s21 }
  0x3f   : > { %s223_s20 = scalar_lea.sflag [#allocation4], %s718_s28  ;;  %s472_s25 = scalar_lea.vmem %s744_s5, 16 }
  0x40   : > { %p473_p8 = scmp.ne.s32.totalorder %s744_s5, %s472_s25  ;;  %p833_p9 = scmp.ne.s32.totalorder %s828_s22, 0 }
  0x41   : > { %s590_s26 = smov [#allocation5]  }
  0x42   : > { %p474_p11 = pnand %p473_p8, %p833_p9  ;;  %s476_s27 = sshll.u32 %s590_s26, 4  ;;  %s477_s27 = int_to_ptr.vmem [resolvable:$false] %s476_s27 }
  0x43   : > { %v197_v20 = vld [vmem:[%s727_s30] sm:$0x1]  ;;  %s478_s29 = scalar_lea.vmem %s477_s27, 32  ;;  %p479_p7 = scmp.lt.s32.totalorder %s744_s5, %s477_s27 }
  0x44   : > { %v209_v21 = vld [vmem:[%s731_s4] sm:$0x1]  ;;  %p475_p0 = pneg %p474_p11  ;;  %p480_p13 = scmp.lt.s32.totalorder %s478_s29, %s472_s25 }
  0x46   : > { %p481_p3 = por %p480_p13, %p479_p7 }
  0x48   : > { %v439_v3 = vpop.eup %438  ;;  %p482_p6 = pnand %p481_p3, %p475_p0 }
  0x49   : > { %v194_v4 = vadd.f32 1.0, %v439_v3 }
  0x4b   : > { %440 = vrcp.f32 %v194_v4 }
  0x55   : > { %v441_v5 = vpop.eup %440 }
  0x56   : > { %v198_v6 = vmul.f32 %v441_v5, %v441_v5  ;;  %vm210_vm1 = vcmp.gt.f32.partialorder %v441_v5, 0.25 }
  0x57   : > { %v365_v7 = vsel %vm210_vm1, 1.0, %v589_v0 }
  0x58   : > { %v200_v8 = vsel %vm199_vm0, %v198_v6, 0.0  ;;  %v213_v9 = vsel %vm199_vm0, %v365_v7, 0.0 }
  0x59   : > { %v201_v10 = vrot.slane %v200_v8, 4  ;;  %v214_v11 = vrot.slane %v213_v9, 4 }
  0x5b   : > { %v202_v12 = vadd.f32 %v201_v10, %v200_v8  ;;  %v215_v13 = vadd.f32 %v214_v11, %v213_v9 }
  0x5d   : > { %v203_v14 = vrot.slane %v202_v12, 2  ;;  %v216_v15 = vrot.slane %v215_v13, 2 }
  0x5f   : > { %v204_v16 = vadd.f32 %v203_v14, %v202_v12  ;;  %v217_v17 = vadd.f32 %v216_v15, %v215_v13 }
  0x61   : > { %v218_v18 = vrot.slane %v217_v17, 1  ;;  %v205_v19 = vrot.slane %v204_v16, 1 }
  0x63   : > { %v206_v22 = vadd.f32 %v205_v19, %v204_v16  ;;  %v219_v23 = vadd.f32 %v218_v18, %v217_v17 }
  0x65   : > { %v207_v24 = vadd.f32 %v206_v22, %v197_v20  ;;  %v220_v25 = vadd.f32 %v219_v23, %v209_v21 }
  0x67   : > { %208 = vst [vmem:[%s727_s30] sm:$0x1] %v207_v24  ;;  %221 = vst [vmem:[%s731_s4] sm:$0x1] %v220_v25 }
  0x68   : > { %485 = shalt.err (!%p482_p6)
}
  0x69   : > { %s486_s3 = scalar_lea.hbm %s742_s16, 16  ;;  %s490_s4 = scalar_lea.hbm %s823_s1, 32 }
  0x6a   : > { %p487_p4 = scmp.ne.s32.totalorder %s742_s16, %s486_s3  ;;  %p491_p1 = scmp.lt.u32.totalorder %s742_s16, %s823_s1 }
  0x6b   : > { %p492_p2 = scmp.lt.u32.totalorder %s490_s4, %s486_s3  ;;  %p494_p8 = scmp.lt.u32.totalorder %s486_s3, %s742_s16 }
  0x6c   : > { %p488_p10 = pnand %p487_p4, %p833_p9 }
  0x6d   : > { %p493_p5 = por %p492_p2, %p491_p1 }
  0x6e   : > { %p489_p12 = pneg %p488_p10 }
  0x6f   : > { %p495_p11 = por %p494_p8, %p493_p5 }
  0x71   : > { %p496_p0 = pnand %p495_p11, %p489_p12 }
  0x73   : > { %499 = shalt.err (!%p496_p0)
}
  0x74   : > { %372 = dma.vmem_to_hbm [thread:$0]  (%p833_p9), %s744_s5, 16, %s742_s16, %s223_s20  }
  0x75   : > { %s227_s15 = scalar_lea.sflag [#allocation7], %s718_s28  ;;  %s500_s18 = scalar_lea.vmem %s751_s6, 16 }
  0x76   : > { %p501_p7 = scmp.ne.s32.totalorder %s751_s6, %s500_s18  ;;  %s591_s19 = smov [#allocation6]  }
  0x77   : > { %s504_s25 = sshll.u32 %s591_s19, 4  ;;  %s505_s25 = int_to_ptr.vmem [resolvable:$false] %s504_s25 }
  0x78   : > { %p502_p13 = pnand %p501_p7, %p833_p9  ;;  %s506_s26 = scalar_lea.vmem %s505_s25, 32 }
  0x79   : > { %p507_p6 = scmp.lt.s32.totalorder %s751_s6, %s505_s25  ;;  %p508_p4 = scmp.lt.s32.totalorder %s506_s26, %s500_s18 }
  0x7a   : > { %p503_p3 = pneg %p502_p13 }
  0x7b   : > { %p509_p10 = por %p508_p4, %p507_p6 }
  0x7d   : > { %p510_p12 = pnand %p509_p10, %p503_p3 }
  0x7f   : > { %513 = shalt.err (!%p510_p12)
}
  0x80   : > { %s514_s28 = scalar_lea.hbm %s749_s12, 16  ;;  %s518_s20 = scalar_lea.hbm %s824_s2, 32 }
  0x81   : > { %p515_p1 = scmp.ne.s32.totalorder %s749_s12, %s514_s28  ;;  %p519_p8 = scmp.lt.u32.totalorder %s749_s12, %s824_s2 }
  0x82   : > { %p520_p11 = scmp.lt.u32.totalorder %s518_s20, %s514_s28  ;;  %p522_p7 = scmp.lt.u32.totalorder %s514_s28, %s749_s12 }
  0x83   : > { %p516_p2 = pnand %p515_p1, %p833_p9 }
  0x84   : > { %p521_p0 = por %p520_p11, %p519_p8 }
  0x85   : > { %p517_p5 = pneg %p516_p2 }
  0x86   : > { %p523_p13 = por %p522_p7, %p521_p0 }
  0x88   : > { %p524_p3 = pnand %p523_p13, %p517_p5 }
  0x8a   : > { %527 = shalt.err (!%p524_p3)
}
  0x8b   : > { %373 = dma.vmem_to_hbm [thread:$0]  (%p833_p9), %s751_s6, 16, %s749_s12, %s227_s15  }
  0x8c PF: > { %s264_s3 = sand.u32 1, %s566_s9   ;;  %p834_p6 = scmp.ne.s32.totalorder %s829_s24, 0 }
  0x8d   : > { %p835_p4 = scmp.ge.s32.totalorder %s586_s14, 2  ;;  %s265_s7 = scalar_lea.sflag [#allocation4], %s264_s3 }
  0x8f   : > { %p381_p10 = pnand %p835_p4, %p834_p6 }
  0x91   : > { %557 = dma.done.wait (!%p381_p10), %s265_s7, 16  }
  0x92   : > { %559 = vsyncadd (!%p381_p10), %s265_s7, 4294967280  ;;  %s273_s30 = scalar_lea.sflag [#allocation7], %s264_s3 }
  0x93   : > { %561 = dma.done.wait (!%p381_p10), %s273_s30, 16  }
  0x94   : > { %563 = vsyncadd (!%p381_p10), %s273_s30, 4294967280  ;;  %s22_s14 = sadd.s32 1, %s586_s14   ;;  %s836_s9 = smov %s570_s10 }
  0x95   : > { %p19_p12 = scmp.ge.s32.totalorder %s22_s14, 4   ;;  %s837_s10 = smov %s574_s11 }
  0x96   : > { %s838_s11 = smov %s663_s23  ;;  %s839_s12 = smov %s582_s13 }
  0x97   : > { %s840_s13 = smov %s842_s17  ;;  %21 = sbr.rel (!%p19_p12) target bundleno = 8 (0x8), region = 90 }
  0x9e   :  { %277 = vsyncpa [#allocation3], 1 }
  0x9f   :  { %279 = vsyncpa [#allocation3 + $0x1], 1 }
  0xa0   :  { %280 = vsyncpa [#allocation4], 1 }
  0xa1   :  { %282 = vsyncpa [#allocation4 + $0x1], 1 }
  0xa2   :  { %283 = vsyncpa [#allocation7], 1 }
  0xa3   :  { %285 = vsyncpa [#allocation7 + $0x1], 1 }

</bundles_post_ra>
